<compile_context>
chip_gen: v6e
topology: v6e:2x2x1
jax: 0.10.0
libtpu: 0.0.40
codegen_flags: <defaults>
</compile_context>

<pallas_src>
import math

import jax
import jax.numpy as jnp
from jax import lax
from jax.experimental import pallas as pl
from jax.experimental.pallas import tpu as pltpu

_REG_MU = 5.0e15
_REG_STD = 1.0e16
_EPS = 1e-6
_HALF_LOG_2PI = 0.5 * math.log(2.0 * math.pi)  # Python float -> plain literal


def _make_kernel(n_elems: int, tile_rows: int, chunk_rows: int, needs_mask: bool):
    """Streaming kernel over (tile_rows, 128) blocks of mu/std/wcp."""
    n_chunks = tile_rows // chunk_rows

    def kernel(mu_ref, std_ref, wcp_ref, out_ref,
               acc_quad, acc_log, acc_mu2, acc_var):
        step = pl.program_id(0)

        @pl.when(step == 0)
        def _init():
            acc_quad[...] = jnp.zeros_like(acc_quad)
            acc_log[...] = jnp.zeros_like(acc_log)
            acc_mu2[...] = jnp.zeros_like(acc_mu2)
            acc_var[...] = jnp.zeros_like(acc_var)

        def fold(x):
            # (chunk_rows, 128) -> (8, 128) via sublane-group adds (pure VPU,
            # reshape stays inside (8,128) tile boundaries).
            if x.shape[0] == 8:
                return x
            return x.reshape(-1, 8, 128).sum(axis=0)

        def chunk_body(c, carry):
            a_q, a_l, a_m, a_v = carry
            r0 = c * chunk_rows
            if not isinstance(r0, int):
                r0 = pl.multiple_of(r0, 8)

            # Native-dtype streaming; cast to f32 in-kernel (halves HBM bytes
            # for bf16 inputs; mandatory on v5e which has no bf16 VPU/EUP).
            mu = mu_ref[pl.ds(r0, chunk_rows), :].astype(jnp.float32)
            std = std_ref[pl.ds(r0, chunk_rows), :].astype(jnp.float32) + _EPS
            wcp = wcp_ref[pl.ds(r0, chunk_rows), :].astype(jnp.float32)

            if needs_mask:
                # Mask padded / out-of-bounds tail elements (assumes n < 2^31).
                row = lax.broadcasted_iota(jnp.int32, (chunk_rows, 128), 0)
                lane = lax.broadcasted_iota(jnp.int32, (chunk_rows, 128), 1)
                base = (step * tile_rows + c * chunk_rows) * 128
                valid = (base + row * 128 + lane) < n_elems
                mu = jnp.where(valid, mu, 0.0)
                wcp = jnp.where(valid, wcp, 0.0)
                std = jnp.where(valid, std, 1.0)  # log(1)=0, 1/1=1, diff=0

            var = std * std                     # (std + eps)^2
            diff = wcp - mu
            # Hot chain per element: sub, mul, mul (+EUP recip, EUP log).
            # The -0.5 factor and the 0.5*log(2*pi) constant are applied once
            # in the finalize step, not per element.
            quad = (diff * diff) * pl.reciprocal(var, approx=True)
            logs = jnp.log(std)
            mu2 = mu * mu
            var_c = jnp.where(valid, var, 0.0) if needs_mask else var

            return (a_q + fold(quad), a_l + fold(logs),
                    a_m + fold(mu2), a_v + fold(var_c))

        zero = jnp.zeros((8, 128), jnp.float32)
        init = (zero, zero, zero, zero)
        if n_chunks == 1:
            p_q, p_l, p_m, p_v = chunk_body(0, init)
        else:
            p_q, p_l, p_m, p_v = lax.fori_loop(0, n_chunks, chunk_body, init)

        # One single-vreg RMW per accumulator per grid step (VMEM scratch, not
        # the pipelined output block).
        acc_quad[...] += p_q
        acc_log[...] += p_l
        acc_mu2[...] += p_m
        acc_var[...] += p_v

        @pl.when(step == pl.num_programs(0) - 1)
        def _finalize():
            s_quad = jnp.sum(acc_quad[...])
            s_log = jnp.sum(acc_log[...])
            s_mu2 = jnp.sum(acc_mu2[...])
            s_var = jnp.sum(acc_var[...])
            # sum(log_prob) = -0.5 * sum(diff^2/var) - sum(log std) - n*0.5*log(2pi)
            sum_log_prob = (-0.5) * s_quad - s_log - (float(n_elems) * _HALF_LOG_2PI)
            loss = (sum_log_prob * (1.0 / float(n_elems))
                    + _REG_MU * s_mu2 + _REG_STD * s_var)
            out_ref[...] = jnp.full((8, 128), -loss, dtype=jnp.float32)

    return kernel


def _pick_chunk_rows(tile_rows: int) -> int:
    """Largest multiple-of-8 divisor of tile_rows that is <= 128."""
    if tile_rows <= 128:
        return tile_rows
    for c in range(128, 7, -8):
        if tile_rows % c == 0:
            return c
    return 8  # unreachable: tile_rows is always a multiple of 8


def logprob_loss(mu, std, wcp, *, max_tile_rows: int = 2048):
    assert mu.shape == std.shape == wcp.shape
    n = mu.size
    assert n > 0

    lane = 128
    itemsize = jnp.dtype(mu.dtype).itemsize
    # Sublane granularity for the native streaming dtype (f32:8, bf16:16, 8-bit:32).
    sublane = {4: 8, 2: 16, 1: 32}.get(itemsize, 8)

    rows = -(-n // lane)
    rows_padded = -(-rows // sublane) * sublane
    padded_n = rows_padded * lane

    def to_slab(x):
        flat = x.reshape(-1)
        if padded_n != n:           # only pads when the input is ragged
            flat = jnp.pad(flat, (0, padded_n - n))
        return flat.reshape(rows_padded, lane)

    mu2, std2, wcp2 = to_slab(mu), to_slab(std), to_slab(wcp)

    # Fixed large tile; ragged tail handled by the in-kernel mask (never falls
    # back to tiny tiles for awkward row counts).
    tile_rows = rows_padded if rows_padded <= max_tile_rows else max_tile_rows
    steps = -(-rows_padded // tile_rows)
    chunk_rows = _pick_chunk_rows(tile_rows)
    needs_mask = (steps * tile_rows * lane) != n

    in_spec = pl.BlockSpec((tile_rows, lane), lambda i: (i, 0))
    out_spec = pl.BlockSpec((8, lane), lambda i: (0, 0))

    cost = pl.CostEstimate(
        flops=12 * n,
        transcendentals=2 * n,                       # reciprocal + log per element
        bytes_accessed=3 * rows_padded * lane * itemsize + 8 * lane * 4,
    )

    out = pl.pallas_call(
        _make_kernel(n, tile_rows, chunk_rows, needs_mask),
        out_shape=jax.ShapeDtypeStruct((8, lane), jnp.float32),
        grid=(steps,),
        in_specs=[in_spec, in_spec, in_spec],
        out_specs=out_spec,
        scratch_shapes=[pltpu.VMEM((8, lane), jnp.float32)] * 4,
        compiler_params=pltpu.CompilerParams(
            dimension_semantics=("arbitrary",),
            vmem_limit_bytes=32 * 1024 * 1024,
        ),
        cost_estimate=cost,
    )(mu2, std2, wcp2)

    return out[0, 0]


def _reference(mu, std, wcp):
    mu = mu.astype(jnp.float32)
    wcp = wcp.astype(jnp.float32)
    std = std.astype(jnp.float32) + _EPS
    var = std * std
    log_prob = -((wcp - mu) ** 2) / (2.0 * var) - jnp.log(std) - _HALF_LOG_2PI
    loss = jnp.mean(log_prob) + _REG_MU * jnp.sum(mu ** 2) + _REG_STD * jnp.sum(var)
    return -loss


if __name__ == "__main__":
    key = jax.random.PRNGKey(0)
    k_mu, k_std, k_wcp = jax.random.split(key, 3)

    shape = (2, 4, 16, 16)  # NCHW, 2048 elements -> a (16, 128) slab, single step
    mu = 0.01 * jax.random.normal(k_mu, shape, dtype=jnp.float32)
    std = jnp.abs(0.1 * jax.random.normal(k_std, shape, dtype=jnp.float32)) + 0.05
    wcp = 0.01 * jax.random.normal(k_wcp, shape, dtype=jnp.float32)

    loss = jax.block_until_ready(logprob_loss(mu, std, wcp))
    ref = jax.block_until_ready(_reference(mu, std, wcp))

    rel_err = jnp.abs(loss - ref) / (jnp.abs(ref) + 1e-30)
    assert rel_err < 1e-4, f"mismatch: kernel={loss}, ref={ref}, rel_err={rel_err}"
    print("KERNEL_OK")
</pallas_src>

<mosaic_0001>
module attributes {stable_mosaic.version = 11 : i64} {
  func.func @kernel(%arg0: i32, %arg1: memref<16x128xf32, #tpu.memory_space<vmem>>, %arg2: memref<16x128xf32, #tpu.memory_space<vmem>>, %arg3: memref<16x128xf32, #tpu.memory_space<vmem>>, %arg4: memref<8x128xf32, #tpu.memory_space<vmem>>, %arg5: memref<8x128xf32, #tpu.memory_space<vmem>>, %arg6: memref<8x128xf32, #tpu.memory_space<vmem>>, %arg7: memref<8x128xf32, #tpu.memory_space<vmem>>, %arg8: memref<8x128xf32, #tpu.memory_space<vmem>>) attributes {dimension_semantics = [#tpu.dimension_semantics<arbitrary>], iteration_bounds = array<i64: 1>, scalar_prefetch = 0 : i64, scratch_operands = 4 : i64, tpu.core_type = #tpu.core_type<tc>, window_params = [{transform_indices = @transform_0, window_bounds = array<i64: 16, 128>}, {transform_indices = @transform_1, window_bounds = array<i64: 16, 128>}, {transform_indices = @transform_2, window_bounds = array<i64: 16, 128>}, {pipeline_mode = #tpu.pipeline_mode<synchronous>, transform_indices = @transform_3, window_bounds = array<i64: 8, 128>}]} {
    %c0_i32 = arith.constant 0 : i32
    %0 = arith.cmpi eq, %arg0, %c0_i32 : i32
    %1 = arith.extui %0 : i1 to i32
    %c0_i32_0 = arith.constant 0 : i32
    %2 = arith.cmpi ne, %1, %c0_i32_0 : i32
    scf.if %2 {
      %cst_29 = arith.constant 0.000000e+00 : f32
      %43 = vector.broadcast %cst_29 : f32 to vector<8x128xf32>
      %c0_30 = arith.constant 0 : index
      %c0_31 = arith.constant 0 : index
      %44 = vector.load %arg5[%c0_30, %c0_31] : memref<8x128xf32, #tpu.memory_space<vmem>>, vector<8x128xf32>
      tpu.vector_store %arg5[%c0_30, %c0_31], %43 {strides = array<i32>} : memref<8x128xf32, #tpu.memory_space<vmem>>, vector<8x128xf32>,
      %cst_32 = arith.constant 0.000000e+00 : f32
      %45 = vector.broadcast %cst_32 : f32 to vector<8x128xf32>
      %c0_33 = arith.constant 0 : index
      %c0_34 = arith.constant 0 : index
      %46 = vector.load %arg6[%c0_33, %c0_34] : memref<8x128xf32, #tpu.memory_space<vmem>>, vector<8x128xf32>
      tpu.vector_store %arg6[%c0_33, %c0_34], %45 {strides = array<i32>} : memref<8x128xf32, #tpu.memory_space<vmem>>, vector<8x128xf32>,
      %cst_35 = arith.constant 0.000000e+00 : f32
      %47 = vector.broadcast %cst_35 : f32 to vector<8x128xf32>
      %c0_36 = arith.constant 0 : index
      %c0_37 = arith.constant 0 : index
      %48 = vector.load %arg7[%c0_36, %c0_37] : memref<8x128xf32, #tpu.memory_space<vmem>>, vector<8x128xf32>
      tpu.vector_store %arg7[%c0_36, %c0_37], %47 {strides = array<i32>} : memref<8x128xf32, #tpu.memory_space<vmem>>, vector<8x128xf32>,
      %cst_38 = arith.constant 0.000000e+00 : f32
      %49 = vector.broadcast %cst_38 : f32 to vector<8x128xf32>
      %c0_39 = arith.constant 0 : index
      %c0_40 = arith.constant 0 : index
      %50 = vector.load %arg8[%c0_39, %c0_40] : memref<8x128xf32, #tpu.memory_space<vmem>>, vector<8x128xf32>
      tpu.vector_store %arg8[%c0_39, %c0_40], %49 {strides = array<i32>} : memref<8x128xf32, #tpu.memory_space<vmem>>, vector<8x128xf32>,
    } else {
    }
    %cst = arith.constant 0.000000e+00 : f32
    %3 = vector.broadcast %cst : f32 to vector<8x128xf32>
    %c0 = arith.constant 0 : index
    %c0_1 = arith.constant 0 : index
    %4 = vector.load %arg1[%c0, %c0_1] : memref<16x128xf32, #tpu.memory_space<vmem>>, vector<16x128xf32>
    %c0_2 = arith.constant 0 : index
    %c0_3 = arith.constant 0 : index
    %5 = vector.load %arg2[%c0_2, %c0_3] : memref<16x128xf32, #tpu.memory_space<vmem>>, vector<16x128xf32>
    %cst_4 = arith.constant 9.99999997E-7 : f32
    %6 = vector.broadcast %cst_4 : f32 to vector<16x128xf32>
    %7 = arith.addf %5, %6 : vector<16x128xf32>
    %c0_5 = arith.constant 0 : index
    %c0_6 = arith.constant 0 : index
    %8 = vector.load %arg3[%c0_5, %c0_6] : memref<16x128xf32, #tpu.memory_space<vmem>>, vector<16x128xf32>
    %9 = arith.mulf %7, %7 : vector<16x128xf32>
    %10 = arith.subf %8, %4 : vector<16x128xf32>
    %11 = arith.mulf %10, %10 : vector<16x128xf32>
    %12 = tpu.reciprocal %9 {approx = true} : vector<16x128xf32> -> vector<16x128xf32>
    %13 = arith.mulf %11, %12 : vector<16x128xf32>
    %14 = math.log %7 : vector<16x128xf32>
    %15 = arith.mulf %4, %4 : vector<16x128xf32>
    %16 = vector.shape_cast %13 : vector<16x128xf32> to vector<2x8x128xf32>
    %cst_7 = arith.constant dense<0.000000e+00> : vector<8x128xf32>
    %17 = vector.multi_reduction <add>, %16, %cst_7 [0] : vector<2x8x128xf32> to vector<8x128xf32>
    %18 = arith.addf %3, %17 : vector<8x128xf32>
    %19 = vector.shape_cast %14 : vector<16x128xf32> to vector<2x8x128xf32>
    %cst_8 = arith.constant dense<0.000000e+00> : vector<8x128xf32>
    %20 = vector.multi_reduction <add>, %19, %cst_8 [0] : vector<2x8x128xf32> to vector<8x128xf32>
    %21 = arith.addf %3, %20 : vector<8x128xf32>
    %22 = vector.shape_cast %15 : vector<16x128xf32> to vector<2x8x128xf32>
    %cst_9 = arith.constant dense<0.000000e+00> : vector<8x128xf32>
    %23 = vector.multi_reduction <add>, %22, %cst_9 [0] : vector<2x8x128xf32> to vector<8x128xf32>
    %24 = arith.addf %3, %23 : vector<8x128xf32>
    %25 = vector.shape_cast %9 : vector<16x128xf32> to vector<2x8x128xf32>
    %cst_10 = arith.constant dense<0.000000e+00> : vector<8x128xf32>
    %26 = vector.multi_reduction <add>, %25, %cst_10 [0] : vector<2x8x128xf32> to vector<8x128xf32>
    %27 = arith.addf %3, %26 : vector<8x128xf32>
    %c0_11 = arith.constant 0 : index
    %c0_12 = arith.constant 0 : index
    %28 = vector.load %arg5[%c0_11, %c0_12] : memref<8x128xf32, #tpu.memory_space<vmem>>, vector<8x128xf32>
    %29 = arith.addf %28, %18 : vector<8x128xf32>
    %c0_13 = arith.constant 0 : index
    %c0_14 = arith.constant 0 : index
    %30 = vector.load %arg5[%c0_13, %c0_14] : memref<8x128xf32, #tpu.memory_space<vmem>>, vector<8x128xf32>
    tpu.vector_store %arg5[%c0_13, %c0_14], %29 {strides = array<i32>} : memref<8x128xf32, #tpu.memory_space<vmem>>, vector<8x128xf32>,
    %c0_15 = arith.constant 0 : index
    %c0_16 = arith.constant 0 : index
    %31 = vector.load %arg6[%c0_15, %c0_16] : memref<8x128xf32, #tpu.memory_space<vmem>>, vector<8x128xf32>
    %32 = arith.addf %31, %21 : vector<8x128xf32>
    %c0_17 = arith.constant 0 : index
    %c0_18 = arith.constant 0 : index
    %33 = vector.load %arg6[%c0_17, %c0_18] : memref<8x128xf32, #tpu.memory_space<vmem>>, vector<8x128xf32>
    tpu.vector_store %arg6[%c0_17, %c0_18], %32 {strides = array<i32>} : memref<8x128xf32, #tpu.memory_space<vmem>>, vector<8x128xf32>,
    %c0_19 = arith.constant 0 : index
    %c0_20 = arith.constant 0 : index
    %34 = vector.load %arg7[%c0_19, %c0_20] : memref<8x128xf32, #tpu.memory_space<vmem>>, vector<8x128xf32>
    %35 = arith.addf %34, %24 : vector<8x128xf32>
    %c0_21 = arith.constant 0 : index
    %c0_22 = arith.constant 0 : index
    %36 = vector.load %arg7[%c0_21, %c0_22] : memref<8x128xf32, #tpu.memory_space<vmem>>, vector<8x128xf32>
    tpu.vector_store %arg7[%c0_21, %c0_22], %35 {strides = array<i32>} : memref<8x128xf32, #tpu.memory_space<vmem>>, vector<8x128xf32>,
    %c0_23 = arith.constant 0 : index
    %c0_24 = arith.constant 0 : index
    %37 = vector.load %arg8[%c0_23, %c0_24] : memref<8x128xf32, #tpu.memory_space<vmem>>, vector<8x128xf32>
    %38 = arith.addf %37, %27 : vector<8x128xf32>
    %c0_25 = arith.constant 0 : index
    %c0_26 = arith.constant 0 : index
    %39 = vector.load %arg8[%c0_25, %c0_26] : memref<8x128xf32, #tpu.memory_space<vmem>>, vector<8x128xf32>
    tpu.vector_store %arg8[%c0_25, %c0_26], %38 {strides = array<i32>} : memref<8x128xf32, #tpu.memory_space<vmem>>, vector<8x128xf32>,
    %c0_i32_27 = arith.constant 0 : i32
    %40 = arith.cmpi eq, %arg0, %c0_i32_27 : i32
    %41 = arith.extui %40 : i1 to i32
    %c0_i32_28 = arith.constant 0 : i32
    %42 = arith.cmpi ne, %41, %c0_i32_28 : i32
    scf.if %42 {
      %c0_29 = arith.constant 0 : index
      %c0_30 = arith.constant 0 : index
      %43 = vector.load %arg5[%c0_29, %c0_30] : memref<8x128xf32, #tpu.memory_space<vmem>>, vector<8x128xf32>
      %44 = vector.shape_cast %43 : vector<8x128xf32> to vector<1x8x128xf32>
      %cst_31 = arith.constant dense<0.000000e+00> : vector<1xf32>
      %45 = vector.multi_reduction <add>, %44, %cst_31 [1, 2] : vector<1x8x128xf32> to vector<1xf32>
      %46 = vector.shape_cast %45 : vector<1xf32> to vector<1x1x1xf32>
      %47 = vector.extract %46[0, 0, 0] : f32 from vector<1x1x1xf32>
      %c0_32 = arith.constant 0 : index
      %c0_33 = arith.constant 0 : index
      %48 = vector.load %arg6[%c0_32, %c0_33] : memref<8x128xf32, #tpu.memory_space<vmem>>, vector<8x128xf32>
      %49 = vector.shape_cast %48 : vector<8x128xf32> to vector<1x8x128xf32>
      %cst_34 = arith.constant dense<0.000000e+00> : vector<1xf32>
      %50 = vector.multi_reduction <add>, %49, %cst_34 [1, 2] : vector<1x8x128xf32> to vector<1xf32>
      %51 = vector.shape_cast %50 : vector<1xf32> to vector<1x1x1xf32>
      %52 = vector.extract %51[0, 0, 0] : f32 from vector<1x1x1xf32>
      %c0_35 = arith.constant 0 : index
      %c0_36 = arith.constant 0 : index
      %53 = vector.load %arg7[%c0_35, %c0_36] : memref<8x128xf32, #tpu.memory_space<vmem>>, vector<8x128xf32>
      %54 = vector.shape_cast %53 : vector<8x128xf32> to vector<1x8x128xf32>
      %cst_37 = arith.constant dense<0.000000e+00> : vector<1xf32>
      %55 = vector.multi_reduction <add>, %54, %cst_37 [1, 2] : vector<1x8x128xf32> to vector<1xf32>
      %56 = vector.shape_cast %55 : vector<1xf32> to vector<1x1x1xf32>
      %57 = vector.extract %56[0, 0, 0] : f32 from vector<1x1x1xf32>
      %c0_38 = arith.constant 0 : index
      %c0_39 = arith.constant 0 : index
      %58 = vector.load %arg8[%c0_38, %c0_39] : memref<8x128xf32, #tpu.memory_space<vmem>>, vector<8x128xf32>
      %59 = vector.shape_cast %58 : vector<8x128xf32> to vector<1x8x128xf32>
      %cst_40 = arith.constant dense<0.000000e+00> : vector<1xf32>
      %60 = vector.multi_reduction <add>, %59, %cst_40 [1, 2] : vector<1x8x128xf32> to vector<1xf32>
      %61 = vector.shape_cast %60 : vector<1xf32> to vector<1x1x1xf32>
      %62 = vector.extract %61[0, 0, 0] : f32 from vector<1x1x1xf32>
      %cst_41 = arith.constant -5.000000e-01 : f32
      %63 = arith.mulf %cst_41, %47 : f32
      %64 = arith.subf %63, %52 : f32
      %cst_42 = arith.constant 1881.98608 : f32
      %65 = arith.subf %64, %cst_42 : f32
      %cst_43 = arith.constant 4.8828125E-4 : f32
      %66 = arith.mulf %65, %cst_43 : f32
      %cst_44 = arith.constant 5.000000e+15 : f32
      %67 = arith.mulf %cst_44, %57 : f32
      %68 = arith.addf %66, %67 : f32
      %cst_45 = arith.constant 1.000000e+16 : f32
      %69 = arith.mulf %cst_45, %62 : f32
      %70 = arith.addf %68, %69 : f32
      %cst_46 = arith.constant 0.000000e+00 : f32
      %71 = arith.subf %cst_46, %70 : f32
      %72 = vector.broadcast %71 : f32 to vector<8x128xf32>
      %c0_47 = arith.constant 0 : index
      %c0_48 = arith.constant 0 : index
      %73 = vector.load %arg4[%c0_47, %c0_48] : memref<8x128xf32, #tpu.memory_space<vmem>>, vector<8x128xf32>
      tpu.vector_store %arg4[%c0_47, %c0_48], %72 {strides = array<i32>} : memref<8x128xf32, #tpu.memory_space<vmem>>, vector<8x128xf32>,
    } else {
    }
    return
  }
  func.func @transform_0(%arg0: i32) -> (i32, i32) {
    %c0_i32 = arith.constant 0 : i32
    %c0_i32_0 = arith.constant 0 : i32
    return %arg0, %c0_i32 : i32, i32
  }
  func.func @transform_1(%arg0: i32) -> (i32, i32) {
    %c0_i32 = arith.constant 0 : i32
    %c0_i32_0 = arith.constant 0 : i32
    return %arg0, %c0_i32 : i32, i32
  }
  func.func @transform_2(%arg0: i32) -> (i32, i32) {
    %c0_i32 = arith.constant 0 : i32
    %c0_i32_0 = arith.constant 0 : i32
    return %arg0, %c0_i32 : i32, i32
  }
  func.func @transform_3(%arg0: i32) -> (i32, i32) {
    %c0_i32 = arith.constant 0 : i32
    %c0_i32_0 = arith.constant 0 : i32
    %c0_i32_1 = arith.constant 0 : i32
    return %c0_i32, %c0_i32_0 : i32, i32
  }
}

</mosaic_0001>

<bundles_post_ra>
// kernel: tpu_custom_call.1
= control target key start
LH: loop header
LB: loop body
LE: loop exit
PB: predicated region body
PF: predicated region fallthrough
CT: control target
= control target key end

     0   :  { %8 = vsyncpa [#allocation7], 0  ;;  %s325_s0 = inlined_call_operand.hbm [shape: f32[16,128], index: 0, kind: input, shape index: {}]   ;;  %s326_s1 = inlined_call_operand.hbm [shape: f32[16,128], index: 1, kind: input, shape index: {}]   ;;  %s327_s2 = inlined_call_operand.hbm [shape: f32[16,128], index: 2, kind: input, shape index: {}]   ;;  %s328_s3 = inlined_call_operand.hbm [shape: f32[8,128], index: 3, kind: output, shape index: {}]  }
   0x1   :  { %9 = vsyncpa [#allocation10], 0 }
   0x2   :  { %10 = vsyncpa [#allocation8], 0  ;;  %s287_s12 = smov [#allocation9]   ;;  %s288_s14 = smov [#allocation6]  }
   0x3   :  { %s28_s13 = sshll.u32 %s287_s12, 4  ;;  %s16_s15 = sshll.u32 %s288_s14, 4  ;;  %s29_s13 = int_to_ptr.vmem [resolvable:$true] %s28_s13  ;;  %s17_s15 = int_to_ptr.vmem [resolvable:$true] %s16_s15 }
   0x4   :  { %s209_s16 = scalar_lea.vmem %s29_s13, 256  ;;  %p214_p1 = scmp.lt.s32.totalorder %s29_s13, %s29_s13 }
   0x5   :  { %p210_p0 = scmp.ne.s32.totalorder %s29_s13, %s209_s16  ;;  %p215_p2 = scmp.lt.s32.totalorder %s209_s16, %s209_s16 }
   0x7   :  { %p216_p3 = por %p215_p2, %p214_p1 }
   0x9   :  { %p217_p4 = pnand %p216_p3, %p210_p0 }
   0xb   :  { %220 = shalt.err (!%p217_p4)
}
   0xc   :  { %s289_s17 = smov 128   ;;  %s290_s18 = smov 8  }
   0xd   :  { %34 = dma.hbm_to_vmem [thread:$0]  %s326_s1, 256, %s29_s13, [#allocation10], %s289_s17, %s289_s17, %s290_s18  }
   0xe   :  { %s229_s21 = scalar_lea.vmem %s17_s15, 256  ;;  %p234_p6 = scmp.lt.s32.totalorder %s17_s15, %s17_s15 }
   0xf   :  { %p230_p5 = scmp.ne.s32.totalorder %s17_s15, %s229_s21  ;;  %p235_p7 = scmp.lt.s32.totalorder %s229_s21, %s229_s21 }
  0x11   :  { %p236_p8 = por %p235_p7, %p234_p6 }
  0x13   :  { %p237_p9 = pnand %p236_p8, %p230_p5 }
  0x15   :  { %240 = shalt.err (!%p237_p9)
}
  0x16   :  { %22 = dma.hbm_to_vmem [thread:$0]  %s325_s0, 256, %s17_s15, [#allocation7], %s289_s17, %s289_s17, %s290_s18  }
  0x17   :  { %s291_s24 = smov [#allocation11]  }
  0x18   :  { %s40_s25 = sshll.u32 %s291_s24, 4  ;;  %s41_s25 = int_to_ptr.vmem [resolvable:$true] %s40_s25 }
  0x19   :  { %s249_s26 = scalar_lea.vmem %s41_s25, 256  ;;  %p254_p11 = scmp.lt.s32.totalorder %s41_s25, %s41_s25 }
  0x1a   :  { %p250_p10 = scmp.ne.s32.totalorder %s41_s25, %s249_s26  ;;  %p255_p12 = scmp.lt.s32.totalorder %s249_s26, %s249_s26 }
  0x1c   :  { %p256_p13 = por %p255_p12, %p254_p11 }
  0x1e   :  { %p257_p0 = pnand %p256_p13, %p250_p10 }
  0x20   :  { %260 = shalt.err (!%p257_p0)
}
  0x21   :  { %46 = dma.hbm_to_vmem [thread:$0]  %s327_s2, 256, %s41_s25, [#allocation10], %s289_s17, %s289_s17, %s290_s18  }
  0x22   :  { %281 = dma.done.wait [#allocation7], 256  }
  0x23   :  { %282 = vsyncadd [#allocation7], 4294967040 }
  0x24   :  { %283 = dma.done.wait [#allocation10], 512  }
  0x25   :  { %284 = vsyncadd [#allocation10], 4294966784  ;;  %v64_v0 = vld [vmem:[#allocation6] sm:$0xff]  ;;  %v65_v1 = vld [vmem:[#allocation6 + $0x8] sm:$0xff]  ;;  %s292_s11 = smov [#allocation12]  }
  0x26   :  { %v86_v2 = vmul.f32 %v64_v0, %v64_v0  ;;  %v87_v3 = vmul.f32 %v65_v1, %v65_v1  ;;  %v66_v4 = vld [vmem:[#allocation9] sm:$0xff]  ;;  %v67_v5 = vld [vmem:[#allocation9 + $0x8] sm:$0xff]  ;;  %v70_v12 = vld [vmem:[#allocation11] sm:$0xff]  ;;  %s168_s12 = sshll.u32 %s292_s11, 4  ;;  %s169_s12 = int_to_ptr.vmem [resolvable:$true] %s168_s12 }
  0x27   :  { %v68_v6 = vadd.f32 1e-06, %v66_v4  ;;  %v69_v7 = vadd.f32 1e-06, %v67_v5  ;;  %v71_v13 = vld [vmem:[#allocation11 + $0x8] sm:$0xff]  ;;  %v74_v14 = vsub.f32 %v70_v12, %v64_v0  ;;  %s261_s14 = scalar_lea.vmem %s169_s12, 128  ;;  %p266_p2 = scmp.lt.s32.totalorder %s169_s12, %s169_s12 }
  0x28   :  { %v92_v8 = vadd.f32 %v87_v3, %v86_v2  ;;  %v75_v15 = vsub.f32 %v71_v13, %v65_v1  ;;  %p262_p1 = scmp.ne.s32.totalorder %s169_s12, %s261_s14  ;;  %p267_p3 = scmp.lt.s32.totalorder %s261_s14, %s261_s14 }
  0x29   :  { %v72_v9 = vmul.f32 %v68_v6, %v68_v6  ;;  %v73_v10 = vmul.f32 %v69_v7, %v69_v7  ;;  %193 = vlog2.f32 %v68_v6  ;;  %v76_v16 = vmul.f32 %v74_v14, %v74_v14 }
  0x2a   :  { %132 = vadd.xlane.f32.xlu1 %v92_v8  ;;  %195 = vlog2.f32 %v69_v7  ;;  %v77_v18 = vmul.f32 %v75_v15, %v75_v15  ;;  %p268_p4 = por %p267_p3, %p266_p2 }
  0x2b   :  { %197 = vrcp.f32 %v72_v9  ;;  %v94_v11 = vadd.f32 %v73_v10, %v72_v9 }
  0x2c   :  { %199 = vrcp.f32 %v73_v10  ;;  %p269_p5 = pnand %p268_p4, %p262_p1 }
  0x2e   :  { %142 = vadd.xlane.f32.xlu1 %v94_v11 }
  0x36   :  { %v194_v17 = vpop.eup %193 }
  0x37   :  { %v196_v19 = vpop.eup %195  ;;  %v83_v24 = vmul.f32 0.6931472, %v194_v17 }
  0x38   :  { %v198_v20 = vpop.eup %197  ;;  %v85_v25 = vmul.f32 0.6931472, %v196_v19 }
  0x39   :  { %v200_v21 = vpop.eup %199  ;;  %v80_v22 = vmul.f32 %v198_v20, %v76_v16 }
  0x3a   :  { %v81_v23 = vmul.f32 %v200_v21, %v77_v18  ;;  %v90_v27 = vadd.f32 %v85_v25, %v83_v24 }
  0x3c   :  { %v88_v26 = vadd.f32 %v81_v23, %v80_v22 }
  0x3e   :  { %112 = vadd.xlane.f32.xlu0 %v88_v26 }
  0x42   :  { %122 = vadd.xlane.f32.xlu0 %v90_v27 }
  0xb3   :  { %v133_v28 = vpop.xlane.xlu1 %132 }
  0xb4   :  { %v134_v31 = vrot.slane %v133_v28, 4 }
  0xb6   :  { %v135_v33 = vadd.f32 %v134_v31, %v133_v28 }
  0xb7   :  { %v143_v29 = vpop.xlane.xlu1 %142 }
  0xb8   :  { %v144_v30 = vrot.slane %v143_v29, 4  ;;  %v136_v38 = vrot.slane %v135_v33, 2 }
  0xba   :  { %v145_v32 = vadd.f32 %v144_v30, %v143_v29  ;;  %v137_v45 = vadd.f32 %v136_v38, %v135_v33 }
  0xbc   :  { %v146_v37 = vrot.slane %v145_v32, 2  ;;  %v138_v51 = vrot.slane %v137_v45, 1 }
  0xbe   :  { %v147_v42 = vadd.f32 %v146_v37, %v145_v32  ;;  %v139_v55 = vadd.f32 %v138_v51, %v137_v45 }
  0xc0   :  { %v148_v50 = vrot.slane %v147_v42, 1 }
  0xc2   :  { %v149_v54 = vadd.f32 %v148_v50, %v147_v42 }
  0xc7   :  { %v113_v34 = vpop.xlane.xlu0 %112 }
  0xc8   :  { %v114_v35 = vrot.slane %v113_v34, 4 }
  0xca   :  { %v115_v36 = vadd.f32 %v114_v35, %v113_v34 }
  0xcb   :  { %v123_v39 = vpop.xlane.xlu0 %122 }
  0xcc   :  { %v116_v40 = vrot.slane %v115_v36, 2  ;;  %v124_v41 = vrot.slane %v123_v39, 4 }
  0xce   :  { %v125_v43 = vadd.f32 %v124_v41, %v123_v39  ;;  %v117_v44 = vadd.f32 %v116_v40, %v115_v36 }
  0xd0   :  { %v126_v46 = vrot.slane %v125_v43, 2  ;;  %v118_v47 = vrot.slane %v117_v44, 1 }
  0xd2   :  { %v127_v48 = vadd.f32 %v126_v46, %v125_v43  ;;  %v119_v49 = vadd.f32 %v118_v47, %v117_v44 }
  0xd4   :  { %179 = vpush %v119_v49  ;;  %v128_v52 = vrot.slane %v127_v48, 1 }
  0xd6   :  { %v129_v53 = vadd.f32 %v128_v52, %v127_v48 }
  0xd8   :  { %181 = vpush %v129_v53 }
  0xd9   :  { %183 = vpush %v139_v55 }
  0xda   :  { %185 = vpush %v149_v54 }
 0x105   :  { %s180_s0 = spop %179 }
 0x106   :  { %s151_s2 = smul.f32 -0.5, %s180_s0 }
 0x109   :  { %s182_s28 = spop %181 }
 0x10a   :  { %s152_s29 = ssub.f32 %s151_s2, %s182_s28  ;;  %s184_s30 = spop %183 }
 0x10b   :  { %s155_s5 = smul.f32 5e+15, %s184_s30  ;;  %s186_s6 = spop %185 }
 0x10c   :  { %s178_s4 = sadd.f32 -1881.9861, %s152_s29  ;;  %s157_s9 = smul.f32 1e+16, %s186_s6 }
 0x10e   :  { %s154_s7 = smul.f32 0.00048828125, %s178_s4 }
 0x110   :  { %s156_s8 = sadd.f32 %s155_s5, %s154_s7 }
 0x112   :  { %s158_s10 = sadd.f32 %s157_s9, %s156_s8 }
 0x114   :  { %s159_s13 = ssub.f32 0.0, %s158_s10 }
 0x116   :  { %v160_v56 = vstv %s159_s13 }
 0x117   :  { %161 = vst [vmem:[#allocation12] sm:$0xff] %v160_v56 }
 0x118   :  { %272 = shalt.err (!%p269_p5)
}
 0x119   :  { %171 = dma.vmem_to_hbm [thread:$0]  %s169_s12, 128, %s328_s3, [#allocation8]  }
 0x11a   :  { %285 = dma.done.wait [#allocation8], 128  }
 0x11b   :  { %286 = vsyncadd [#allocation8], 4294967168 }
 0x11c   :  { %175 = vsyncpa [#allocation7], 1 }
 0x11d   :  { %176 = vsyncpa [#allocation10], 1 }
 0x11e   :  { %177 = vsyncpa [#allocation8], 1 }

</bundles_post_ra>
